<compile_context>
chip_gen: v6e
topology: v6e:2x2x1
jax: 0.10.0
libtpu: 0.0.40
codegen_flags: <defaults>
</compile_context>

<pallas_src>
import jax
import jax.numpy as jnp
from jax.experimental import pallas as pl
from jax.experimental.pallas import tpu as pltpu


def _round_up(n, m):
    return ((n + m - 1) // m) * m


def _choose_tile(batch, block_batch):
    """Pick the batch tile.

    Small batches: one full-array tile (block == full dims, so the (8,128)
    divisibility rules do not apply).  Large batches: a multiple of 128 (lane
    dim of the class-major output block), capped by block_batch and by half
    the batch so the grid has >=2 steps for megacore sharding.
    """
    if batch <= 256:
        return batch
    half = _round_up((batch + 1) // 2, 128)
    tb = min(block_batch, half)
    return max(128, (tb // 128) * 128)


def mlp_kernel(x_ref,
               w1_ref, b1_ref,
               w2_ref, b2_ref,
               w3_ref, b3_ref,
               w4t_ref, b4_ref,
               out_ref):
    """Fused 4-layer MLP for one batch tile.

    x arrives as f32 and is cast to the MXU dtype (bf16) in-kernel; matmuls
    accumulate in f32; bias/ReLU epilogues run in f32 and re-cast to bf16 for
    the next matmul.  The final 16->2 layer is computed class-major so the
    output block (2, tb) is lane-dense.
    """
    mxu_dtype = w1_ref.dtype

    x = x_ref[...].astype(mxu_dtype)                       # (tb, in_dim) bf16

    # fc1 + ReLU   (input_dim -> 128); dropout(p=0.3) -> identity in eval mode
    h = jnp.dot(x, w1_ref[...], preferred_element_type=jnp.float32)
    h = jnp.maximum(h + b1_ref[...], 0.0).astype(mxu_dtype)

    # fc2 + ReLU   (128 -> 64); dropout(p=0.3) -> identity in eval mode
    h = jnp.dot(h, w2_ref[...], preferred_element_type=jnp.float32)
    h = jnp.maximum(h + b2_ref[...], 0.0).astype(mxu_dtype)

    # fc3 + ReLU   (64 -> 16), kept in f32 for the tiny final layer
    h = jnp.dot(h, w3_ref[...], preferred_element_type=jnp.float32)
    h = jnp.maximum(h + b3_ref[...], 0.0)                  # (tb, 16) f32

    # fc4 (16 -> 2), class-major: out[c, t] = sum_d w4t[c, d] * h[t, d]
    yt = jax.lax.dot_general(
        w4t_ref[...], h,
        dimension_numbers=(((1,), (1,)), ((), ())),
        preferred_element_type=jnp.float32)                # (2, tb)
    out_ref[...] = (yt + b4_ref[...]).astype(out_ref.dtype)


def classification_model_forward(x, params, *, block_batch=8192):
    """Run the fused MLP.  x: [batch, input_dim] float32 -> [batch, 2] float32."""
    batch, input_dim = x.shape
    mxu_dtype = jnp.bfloat16

    tb = _choose_tile(batch, block_batch)
    grid = (pl.cdiv(batch, tb),)

    # Matmul operands for layers 1-3 in bf16; tiny fc4 + all biases stay f32.
    w1 = params["w1"].astype(mxu_dtype)
    w2 = params["w2"].astype(mxu_dtype)
    w3 = params["w3"].astype(mxu_dtype)
    w4t = params["w4"].T.astype(jnp.float32)               # (2, 16)
    b1, b2, b3 = params["b1"], params["b2"], params["b3"]   # (1, N) f32
    b4c = params["b4"].reshape(2, 1).astype(jnp.float32)    # (2, 1) for (2, tb)

    def resident(a):  # full block, constant index_map -> stays VMEM-resident
        return pl.BlockSpec(a.shape, lambda *_: (0,) * a.ndim)

    out_cm = pl.pallas_call(
        mlp_kernel,
        out_shape=jax.ShapeDtypeStruct((2, batch), jnp.float32),
        grid=grid,
        in_specs=[
            pl.BlockSpec((tb, input_dim), lambda i: (i, 0)),   # x tiled on batch
            resident(w1), resident(b1),
            resident(w2), resident(b2),
            resident(w3), resident(b3),
            resident(w4t), resident(b4c),
        ],
        out_specs=pl.BlockSpec((2, tb), lambda i: (0, i)),     # lane-dense logits
        compiler_params=pltpu.CompilerParams(
            dimension_semantics=("parallel",),                 # megacore on v7x
            vmem_limit_bytes=48 * 1024 * 1024),
    )(x, w1, b1, w2, b2, w3, b3, w4t, b4c)

    return out_cm.T                                            # (batch, 2)


def init_params(key, input_dim):
    """Deterministic init mimicking PyTorch nn.Linear default:
    W, b ~ U(-1/sqrt(fan_in), 1/sqrt(fan_in)).
    Weights are stored transposed ([in, out]) relative to PyTorch."""
    dims = [(input_dim, 128), (128, 64), (64, 16), (16, 2)]
    params = {}
    for i, (fan_in, fan_out) in enumerate(dims, start=1):
        key, kw, kb = jax.random.split(key, 3)
        bound = 1.0 / jnp.sqrt(jnp.float32(fan_in))
        params[f"w{i}"] = jax.random.uniform(
            kw, (fan_in, fan_out), jnp.float32, -bound, bound)
        params[f"b{i}"] = jax.random.uniform(
            kb, (1, fan_out), jnp.float32, -bound, bound)
    return params


def reference_forward(x, params):
    """Pure-JAX reference matching the kernel's numerics (bf16 MXU operands
    for layers 1-3, f32 accumulation, f32 final layer)."""
    md = jnp.bfloat16
    h = jnp.maximum(jnp.dot(x.astype(md), params["w1"].astype(md),
                            preferred_element_type=jnp.float32) + params["b1"], 0.0)
    h = jnp.maximum(jnp.dot(h.astype(md), params["w2"].astype(md),
                            preferred_element_type=jnp.float32) + params["b2"], 0.0)
    h = jnp.maximum(jnp.dot(h.astype(md), params["w3"].astype(md),
                            preferred_element_type=jnp.float32) + params["b3"], 0.0)
    return jnp.dot(h, params["w4"],
                   preferred_element_type=jnp.float32) + params["b4"]


if __name__ == "__main__":
    key = jax.random.PRNGKey(0)
    key, kx1, kx2, kx3, kp = jax.random.split(key, 5)

    input_dim = 32
    params = init_params(kp, input_dim)

    # Small aligned batch: single full-array tile.
    x = jax.random.normal(kx1, (64, input_dim), jnp.float32)
    out = jax.block_until_ready(classification_model_forward(x, params))
    ref = reference_forward(x, params)
    assert out.shape == (64, 2), out.shape
    assert jnp.allclose(out, ref, atol=2e-2, rtol=2e-2), "mismatch vs reference"

    # Ragged small batch: full-array tile, non-multiple-of-8 rows.
    x2 = jax.random.normal(kx2, (50, input_dim), jnp.float32)
    out2 = jax.block_until_ready(classification_model_forward(x2, params))
    ref2 = reference_forward(x2, params)
    assert out2.shape == (50, 2), out2.shape
    assert jnp.allclose(out2, ref2, atol=2e-2, rtol=2e-2), "ragged mismatch"

    # Multi-tile batch with a partial last block (exercises the cdiv grid and
    # masked boundary stores of the lane-dense output).
    x3 = jax.random.normal(kx3, (300, input_dim), jnp.float32)
    out3 = jax.block_until_ready(
        classification_model_forward(x3, params, block_batch=128))
    ref3 = reference_forward(x3, params)
    assert out3.shape == (300, 2), out3.shape
    assert jnp.allclose(out3, ref3, atol=2e-2, rtol=2e-2), "multi-tile mismatch"

    print("KERNEL_OK")
</pallas_src>

<mosaic_0001>
module attributes {stable_mosaic.version = 11 : i64} {
  func.func @mlp_kernel(%arg0: i32, %arg1: memref<64x32xf32, #tpu.memory_space<vmem>>, %arg2: memref<32x128xbf16, #tpu.memory_space<vmem>>, %arg3: memref<1x128xf32, #tpu.memory_space<vmem>>, %arg4: memref<128x64xbf16, #tpu.memory_space<vmem>>, %arg5: memref<1x64xf32, #tpu.memory_space<vmem>>, %arg6: memref<64x16xbf16, #tpu.memory_space<vmem>>, %arg7: memref<1x16xf32, #tpu.memory_space<vmem>>, %arg8: memref<2x16xf32, #tpu.memory_space<vmem>>, %arg9: memref<2x1xf32, #tpu.memory_space<vmem>>, %arg10: memref<2x64xf32, #tpu.memory_space<vmem>>) attributes {dimension_semantics = [#tpu.dimension_semantics<parallel>], iteration_bounds = array<i64: 1>, scalar_prefetch = 0 : i64, scratch_operands = 0 : i64, tpu.core_type = #tpu.core_type<tc>, window_params = [{transform_indices = @transform_0, window_bounds = array<i64: 64, 32>}, {pipeline_mode = #tpu.pipeline_mode<synchronous>, transform_indices = @transform_1, window_bounds = array<i64: 32, 128>}, {pipeline_mode = #tpu.pipeline_mode<synchronous>, transform_indices = @transform_2, window_bounds = array<i64: 1, 128>}, {pipeline_mode = #tpu.pipeline_mode<synchronous>, transform_indices = @transform_3, window_bounds = array<i64: 128, 64>}, {pipeline_mode = #tpu.pipeline_mode<synchronous>, transform_indices = @transform_4, window_bounds = array<i64: 1, 64>}, {pipeline_mode = #tpu.pipeline_mode<synchronous>, transform_indices = @transform_5, window_bounds = array<i64: 64, 16>}, {pipeline_mode = #tpu.pipeline_mode<synchronous>, transform_indices = @transform_6, window_bounds = array<i64: 1, 16>}, {pipeline_mode = #tpu.pipeline_mode<synchronous>, transform_indices = @transform_7, window_bounds = array<i64: 2, 16>}, {pipeline_mode = #tpu.pipeline_mode<synchronous>, transform_indices = @transform_8, window_bounds = array<i64: 2, 1>}, {transform_indices = @transform_9, window_bounds = array<i64: 2, 64>}]} {
    %c0 = arith.constant 0 : index
    %c0_0 = arith.constant 0 : index
    %0 = vector.load %arg1[%c0, %c0_0] : memref<64x32xf32, #tpu.memory_space<vmem>>, vector<64x32xf32>
    %1 = arith.truncf %0 : vector<64x32xf32> to vector<64x32xbf16>
    %c0_1 = arith.constant 0 : index
    %c0_2 = arith.constant 0 : index
    %2 = vector.load %arg2[%c0_1, %c0_2] : memref<32x128xbf16, #tpu.memory_space<vmem>>, vector<32x128xbf16>
    %cst = arith.constant dense<0.000000e+00> : vector<64x128xf32>
    %3 = tpu.matmul %1, %2, %cst {dimension_numbers = #tpu.dot_dimension_numbers<[1], [0], [0], [1], [0, 0, 1, 1], [], []>} : vector<64x32xbf16>, vector<32x128xbf16>, vector<64x128xf32> -> vector<64x128xf32>
    %c0_3 = arith.constant 0 : index
    %c0_4 = arith.constant 0 : index
    %4 = vector.load %arg3[%c0_3, %c0_4] : memref<1x128xf32, #tpu.memory_space<vmem>>, vector<1x128xf32>
    %5 = vector.broadcast %4 : vector<1x128xf32> to vector<64x128xf32>
    %6 = arith.addf %3, %5 : vector<64x128xf32>
    %cst_5 = arith.constant 0.000000e+00 : f32
    %7 = vector.broadcast %cst_5 : f32 to vector<64x128xf32>
    %8 = arith.maximumf %6, %7 : vector<64x128xf32>
    %9 = arith.truncf %8 : vector<64x128xf32> to vector<64x128xbf16>
    %c0_6 = arith.constant 0 : index
    %c0_7 = arith.constant 0 : index
    %10 = vector.load %arg4[%c0_6, %c0_7] : memref<128x64xbf16, #tpu.memory_space<vmem>>, vector<128x64xbf16>
    %cst_8 = arith.constant dense<0.000000e+00> : vector<64x64xf32>
    %11 = tpu.matmul %9, %10, %cst_8 {dimension_numbers = #tpu.dot_dimension_numbers<[1], [0], [0], [1], [0, 0, 1, 1], [], []>} : vector<64x128xbf16>, vector<128x64xbf16>, vector<64x64xf32> -> vector<64x64xf32>
    %c0_9 = arith.constant 0 : index
    %c0_10 = arith.constant 0 : index
    %12 = vector.load %arg5[%c0_9, %c0_10] : memref<1x64xf32, #tpu.memory_space<vmem>>, vector<1x64xf32>
    %13 = vector.broadcast %12 : vector<1x64xf32> to vector<64x64xf32>
    %14 = arith.addf %11, %13 : vector<64x64xf32>
    %cst_11 = arith.constant 0.000000e+00 : f32
    %15 = vector.broadcast %cst_11 : f32 to vector<64x64xf32>
    %16 = arith.maximumf %14, %15 : vector<64x64xf32>
    %17 = arith.truncf %16 : vector<64x64xf32> to vector<64x64xbf16>
    %c0_12 = arith.constant 0 : index
    %c0_13 = arith.constant 0 : index
    %18 = vector.load %arg6[%c0_12, %c0_13] : memref<64x16xbf16, #tpu.memory_space<vmem>>, vector<64x16xbf16>
    %cst_14 = arith.constant dense<0.000000e+00> : vector<64x16xf32>
    %19 = tpu.matmul %17, %18, %cst_14 {dimension_numbers = #tpu.dot_dimension_numbers<[1], [0], [0], [1], [0, 0, 1, 1], [], []>} : vector<64x64xbf16>, vector<64x16xbf16>, vector<64x16xf32> -> vector<64x16xf32>
    %c0_15 = arith.constant 0 : index
    %c0_16 = arith.constant 0 : index
    %20 = vector.load %arg7[%c0_15, %c0_16] : memref<1x16xf32, #tpu.memory_space<vmem>>, vector<1x16xf32>
    %21 = vector.broadcast %20 : vector<1x16xf32> to vector<64x16xf32>
    %22 = arith.addf %19, %21 : vector<64x16xf32>
    %cst_17 = arith.constant 0.000000e+00 : f32
    %23 = vector.broadcast %cst_17 : f32 to vector<64x16xf32>
    %24 = arith.maximumf %22, %23 : vector<64x16xf32>
    %c0_18 = arith.constant 0 : index
    %c0_19 = arith.constant 0 : index
    %25 = vector.load %arg8[%c0_18, %c0_19] : memref<2x16xf32, #tpu.memory_space<vmem>>, vector<2x16xf32>
    %cst_20 = arith.constant dense<0.000000e+00> : vector<2x64xf32>
    %26 = tpu.matmul %25, %24, %cst_20 {dimension_numbers = #tpu.dot_dimension_numbers<[1], [1], [0], [0], [0, 0, 1, 0], [], []>} : vector<2x16xf32>, vector<64x16xf32>, vector<2x64xf32> -> vector<2x64xf32>
    %c0_21 = arith.constant 0 : index
    %c0_22 = arith.constant 0 : index
    %27 = vector.load %arg9[%c0_21, %c0_22] : memref<2x1xf32, #tpu.memory_space<vmem>>, vector<2x1xf32>
    %28 = vector.broadcast %27 : vector<2x1xf32> to vector<2x64xf32>
    %29 = arith.addf %26, %28 : vector<2x64xf32>
    %c0_23 = arith.constant 0 : index
    %c0_24 = arith.constant 0 : index
    %30 = vector.load %arg10[%c0_23, %c0_24] : memref<2x64xf32, #tpu.memory_space<vmem>>, vector<2x64xf32>
    tpu.vector_store %arg10[%c0_23, %c0_24], %29 {strides = array<i32>} : memref<2x64xf32, #tpu.memory_space<vmem>>, vector<2x64xf32>,
    return
  }
  func.func @transform_0(%arg0: i32) -> (i32, i32) {
    %c0_i32 = arith.constant 0 : i32
    %c0_i32_0 = arith.constant 0 : i32
    return %arg0, %c0_i32 : i32, i32
  }
  func.func @transform_1(%arg0: i32) -> (i32, i32) {
    %c0_i32 = arith.constant 0 : i32
    %c0_i32_0 = arith.constant 0 : i32
    %c0_i32_1 = arith.constant 0 : i32
    return %c0_i32, %c0_i32_0 : i32, i32
  }
  func.func @transform_2(%arg0: i32) -> (i32, i32) {
    %c0_i32 = arith.constant 0 : i32
    %c0_i32_0 = arith.constant 0 : i32
    %c0_i32_1 = arith.constant 0 : i32
    return %c0_i32, %c0_i32_0 : i32, i32
  }
  func.func @transform_3(%arg0: i32) -> (i32, i32) {
    %c0_i32 = arith.constant 0 : i32
    %c0_i32_0 = arith.constant 0 : i32
    %c0_i32_1 = arith.constant 0 : i32
    return %c0_i32, %c0_i32_0 : i32, i32
  }
  func.func @transform_4(%arg0: i32) -> (i32, i32) {
    %c0_i32 = arith.constant 0 : i32
    %c0_i32_0 = arith.constant 0 : i32
    %c0_i32_1 = arith.constant 0 : i32
    return %c0_i32, %c0_i32_0 : i32, i32
  }
  func.func @transform_5(%arg0: i32) -> (i32, i32) {
    %c0_i32 = arith.constant 0 : i32
    %c0_i32_0 = arith.constant 0 : i32
    %c0_i32_1 = arith.constant 0 : i32
    return %c0_i32, %c0_i32_0 : i32, i32
  }
  func.func @transform_6(%arg0: i32) -> (i32, i32) {
    %c0_i32 = arith.constant 0 : i32
    %c0_i32_0 = arith.constant 0 : i32
    %c0_i32_1 = arith.constant 0 : i32
    return %c0_i32, %c0_i32_0 : i32, i32
  }
  func.func @transform_7(%arg0: i32) -> (i32, i32) {
    %c0_i32 = arith.constant 0 : i32
    %c0_i32_0 = arith.constant 0 : i32
    %c0_i32_1 = arith.constant 0 : i32
    return %c0_i32, %c0_i32_0 : i32, i32
  }
  func.func @transform_8(%arg0: i32) -> (i32, i32) {
    %c0_i32 = arith.constant 0 : i32
    %c0_i32_0 = arith.constant 0 : i32
    %c0_i32_1 = arith.constant 0 : i32
    return %c0_i32, %c0_i32_0 : i32, i32
  }
  func.func @transform_9(%arg0: i32) -> (i32, i32) {
    %c0_i32 = arith.constant 0 : i32
    %c0_i32_0 = arith.constant 0 : i32
    return %c0_i32, %arg0 : i32, i32
  }
}

</mosaic_0001>

<bundles_post_ra>
// kernel: tpu_custom_call.1
= control target key start
LH: loop header
LB: loop body
LE: loop exit
PB: predicated region body
PF: predicated region fallthrough
CT: control target
= control target key end

     0   :  { %vm69_vm0 = vcmask 261120   ;;  %s889_s0 = inlined_call_operand.vmem [shape: f32[64,32], index: 0, kind: input, shape index: {}]   ;;  %s890_s1 = inlined_call_operand.vmem [shape: bf16[32,128], index: 1, kind: input, shape index: {}]   ;;  %s891_s2 = inlined_call_operand.vmem [shape: f32[1,128], index: 2, kind: input, shape index: {}]   ;;  %s892_s3 = inlined_call_operand.vmem [shape: bf16[128,64], index: 3, kind: input, shape index: {}]   ;;  %s893_s4 = inlined_call_operand.vmem [shape: f32[1,64], index: 4, kind: input, shape index: {}]   ;;  %s894_s5 = inlined_call_operand.vmem [shape: bf16[64,16], index: 5, kind: input, shape index: {}]   ;;  %s895_s6 = inlined_call_operand.vmem [shape: f32[1,16], index: 6, kind: input, shape index: {}]   ;;  %s896_s7 = inlined_call_operand.vmem [shape: f32[2,16], index: 7, kind: input, shape index: {}]   ;;  %s897_s8 = inlined_call_operand.vmem [shape: f32[2,1], index: 8, kind: input, shape index: {}]   ;;  %s898_s9 = inlined_call_operand.hbm [shape: f32[2,64], index: 9, kind: output, shape index: {}]  }
   0x1   :  { %v698_v0 = vld [vmem:[%s890_s1 + $0x8] sm:$0xff]   ;;  %v699_v1 = vld [vmem:[%s890_s1] sm:$0xff]   ;;  %v36_v5 = vld [vmem:[%s889_s0 + $0x10] sm:$0xff] }
   0x2   :  { %622 = vmatprep.subr.bf16.mxu1 %v698_v0  ;;  %v34_v2 = vld [vmem:[%s889_s0] sm:$0xff]  ;;  %v35_v3 = vld [vmem:[%s889_s0 + $0x8] sm:$0xff]  ;;  %v37_v6 = vld [vmem:[%s889_s0 + $0x18] sm:$0xff] }
   0x3   :  { %623 = vmatpush3.bf16.msra.mxu1 %v698_v0  ;;  %v42_v4 = vpack.c.bf16 %v35_v3, %v34_v2  ;;  %v38_v7 = vld [vmem:[%s889_s0 + $0x20] sm:$0xff]  ;;  %v39_v8 = vld [vmem:[%s889_s0 + $0x28] sm:$0xff]  ;;  %v700_v9 = vld [vmem:[%s892_s3 + $0x38] sm:$0xff]   ;;  %v43_v10 = vpack.c.bf16 %v37_v6, %v36_v5 }
   0x4   :  { %624 = vmatprep.subr.bf16.mxu1 %v699_v1  ;;  %v44_v11 = vpack.c.bf16 %v39_v8, %v38_v7  ;;  %v701_v12 = vld [vmem:[%s892_s3 + $0x30] sm:$0xff]   ;;  %v41_v14 = vld [vmem:[%s889_s0 + $0x38] sm:$0xff]  ;;  %v702_v15 = vld [vmem:[%s892_s3 + $0x28] sm:$0xff]  }
   0x5   :  { %626 = vmatprep.mubr.msk.bf16.mxu1 %vm69_vm0, %v42_v4  ;;  %v40_v13 = vld [vmem:[%s889_s0 + $0x30] sm:$0xff] }
   0x6   :  { %v45_v16 = vpack.c.bf16 %v41_v14, %v40_v13 }
   0x7   :  { %625 = vmatpush3.bf16.msra.mxu1 %v699_v1 }
   0x8   :  { %634 = vmatprep.subr.bf16.mxu1 %v700_v9 }
   0xa   :  { %627 = vmatmul.mubr.msk.bf16.vlgmr.msra.gmra.mxu1 %vm69_vm0, %v43_v10 }
   0xb   :  { %630 = vmatprep.mubr.msk.bf16.mxu1 %vm69_vm0, %v44_v11  ;;  %635 = vmatpush3.bf16.msra.mxu1 %v700_v9 }
   0xc   :  { %636 = vmatprep.subr.bf16.mxu1 %v701_v12 }
   0xd   :  { %14 = vsyncpa [#allocation3], 0  ;;  %v703_v17 = vld [vmem:[%s892_s3 + $0x20] sm:$0xff]   ;;  %v704_v18 = vld [vmem:[%s892_s3 + $0x18] sm:$0xff]   ;;  %vm346_vm1 = vcmask 523264   ;;  %vm735_vm2 = vmmov 0  }
   0xe   :  { %v705_v19 = vld [vmem:[%s892_s3 + $0x10] sm:$0xff]   ;;  %v706_v20 = vld [vmem:[%s892_s3 + $0x8] sm:$0xff]   ;;  %v707_v21 = vld [vmem:[%s892_s3] sm:$0xff]   ;;  %vm439_vm3 = vcmask 130048   ;;  %s737_s12 = smov [#allocation2]   ;;  %vm537_vm4 = vcmask 517120  }
   0xf   :  { %637 = vmatpush3.bf16.msra.mxu1 %v701_v12  ;;  %v708_v22 = vld [vmem:[%s894_s5 + $0x18] sm:$0xff]   ;;  %v553_v25 = vld [vmem:[%s891_s2] ss:$0 sm:$0xff]  ;;  %v709_v52 = vld [vmem:[%s894_s5 + $0x10] sm:$0xff]   ;;  %s545_s13 = sshll.u32 %s737_s12, 4  ;;  %s546_s13 = int_to_ptr.vmem [resolvable:$true] %s545_s13 }
  0x10   :  { %638 = vmatprep.subr.bf16.mxu1 %v702_v15  ;;  %658 = vmatprep.subr.bf16.mxu0 %v708_v22  ;;  %v710_v53 = vld [vmem:[%s894_s5 + $0x8] sm:$0xff]   ;;  %v711_v54 = vld [vmem:[%s894_s5] sm:$0xff]   ;;  %s712_s14 = scalar_lea.vmem %s546_s13, 32  ;;  %p717_p1 = scmp.lt.s32.totalorder %s546_s13, %s546_s13 }
  0x11   :  { %659 = vmatpush3.bf16.msra.mxu0 %v708_v22  ;;  %v560_v57 = vld [vmem:[%s893_s4] ss:$0 sm:$0xff]  ;;  %v736_v22 = vmov 0   ;;  %p713_p0 = scmp.ne.s32.totalorder %s546_s13, %s712_s14  ;;  %p718_p2 = scmp.lt.s32.totalorder %s712_s14, %s712_s14 }
  0x12   :  { %631 = vmatmul.mubr.msk.bf16.gmra.mxu1 %vm69_vm0, %v45_v16  ;;  %660 = vmatprep.subr.bf16.mxu0 %v709_v52 }
  0x13   :  { %639 = vmatpush3.bf16.msra.mxu1 %v702_v15  ;;  %697 = vset.pattern.permute.xlu0 %v736_v22  ;;  %p719_p3 = por %p718_p2, %p717_p1 }
  0x14   :  { %640 = vmatprep.subr.bf16.mxu1 %v703_v17 }
  0x15   :  { %661 = vmatpush3.bf16.msra.mxu0 %v709_v52  ;;  %p720_p4 = pnand %p719_p3, %p713_p0 }
  0x16   :  { %662 = vmatprep.subr.bf16.mxu0 %v710_v53 }
  0x17   :  { %641 = vmatpush3.bf16.msra.mxu1 %v703_v17 }
  0x18   :  { %642 = vmatprep.subr.bf16.mxu1 %v704_v18 }
  0x19   :  { %663 = vmatpush3.bf16.msra.mxu0 %v710_v53 }
  0x1a   :  { %664 = vmatprep.subr.bf16.mxu0 %v711_v54 }
  0x1b   :  { %643 = vmatpush3.bf16.msra.mxu1 %v704_v18 }
  0x1c   :  { %644 = vmatprep.subr.bf16.mxu1 %v705_v19 }
  0x1d   :  { %665 = vmatpush3.bf16.msra.mxu0 %v711_v54 }
  0x1f   :  { %645 = vmatpush3.bf16.msra.mxu1 %v705_v19 }
  0x20   :  { %646 = vmatprep.subr.bf16.mxu1 %v706_v20 }
  0x23   :  { %647 = vmatpush3.bf16.msra.mxu1 %v706_v20  ;;  %v734_v20 = vmov 0.0  }
  0x24   :  { %648 = vmatprep.subr.bf16.mxu1 %v707_v21  ;;  %674 = vmatprep.subr.mxu0 %v734_v20 }
  0x27   :  { %649 = vmatpush3.bf16.msra.mxu1 %v707_v21  ;;  %v433_v21 = vld [vmem:[%s897_s8] sm:$0x3] }
  0x28   :  { %436 = vperm.xlu0 %697, %v433_v21  }
  0xca   :  { %v628_v23 = vpop.f32.mrf.mxu1 }
  0xcb   :  { %v125_v29 = vadd.f32 %v628_v23, %v553_v25 }
  0xcc   :  { %v116_v24 = vpop.f32.mrf.mxu1 }
  0xcd   :  { %v117_v27 = vadd.f32 %v553_v25, %v116_v24  ;;  %v149_v36 = vmax.f32 %v125_v29, 0.0  ;;  %v569_v29 = vld [vmem:[%s895_s6] ss:$0 sm:$0xff] }
  0xce   :  { %v629_v26 = vpop.f32.mrf.mxu1 }
  0xcf   :  { %v128_v28 = vadd.f32 %v629_v26, %v553_v25  ;;  %v147_v34 = vmax.f32 %v117_v27, 0.0 }
  0xd0   :  { %v119_v30 = vpop.f32.mrf.mxu1 }
  0xd1   :  { %v120_v31 = vadd.f32 %v553_v25, %v119_v30  ;;  %v150_v32 = vmax.f32 %v128_v28, 0.0 }
  0xd2   :  { %v632_v33 = vpop.f32.mrf.mxu1 }
  0xd3   :  { %v148_v35 = vmax.f32 %v120_v31, 0.0  ;;  %v156_v39 = vpack.c.bf16 %v150_v32, %v149_v36  ;;  %v141_v43 = vadd.f32 %v632_v33, %v553_v25 }
  0xd4   :  { %v132_v37 = vpop.f32.mrf.mxu1 }
  0xd5   :  { %v155_v38 = vpack.c.bf16 %v148_v35, %v147_v34  ;;  %v133_v41 = vadd.f32 %v553_v25, %v132_v37  ;;  %v153_v49 = vmax.f32 %v141_v43, 0.0 }
  0xd6   :  { %v633_v40 = vpop.f32.mrf.mxu1 }
  0xd7   :  { %v144_v42 = vadd.f32 %v633_v40, %v553_v25  ;;  %650 = vmatprep.mubr.bf16.mxu1 %v155_v38  ;;  %v151_v47 = vmax.f32 %v133_v41, 0.0 }
  0xd8   :  { %v135_v44 = vpop.f32.mrf.mxu1  ;;  %651 = vmatmul.mubr.bf16.vlgmr.msra.gmra.mxu1 %v156_v39 }
  0xd9   :  { %v136_v45 = vadd.f32 %v553_v25, %v135_v44  ;;  %v154_v46 = vmax.f32 %v144_v42, 0.0 }
  0xdb   :  { %v152_v48 = vmax.f32 %v136_v45, 0.0  ;;  %v158_v51 = vpack.c.bf16 %v154_v46, %v153_v49  ;;  %v437_v49 = vpop.permute.xlu0 %436 }
  0xdd   :  { %v157_v50 = vpack.c.bf16 %v152_v48, %v151_v47  ;;  %v432_v48 = vld [vmem:[%s896_s7] sm:$0x3] }
  0xdf   :  { %654 = vmatprep.mubr.bf16.mxu1 %v157_v50 }
  0xe0   :  { %655 = vmatmul.mubr.bf16.gmra.mxu1 %v158_v51 }
 0x198   :  { %v652_v55 = vpop.f32.mrf.mxu1 }
 0x199   :  { %v273_v61 = vadd.f32 %v652_v55, %v560_v57 }
 0x19a   :  { %v264_v56 = vpop.f32.mrf.mxu1 }
 0x19b   :  { %v265_v59 = vadd.f32 %v560_v57, %v264_v56  ;;  %v297_v4 = vmax.f32 %v273_v61, 0.0 }
 0x19c   :  { %v653_v58 = vpop.f32.mrf.mxu1 }
 0x19d   :  { %v276_v60 = vadd.f32 %v653_v58, %v560_v57  ;;  %v295_v2 = vmax.f32 %v265_v59, 0.0 }
 0x19e   :  { %v267_v62 = vpop.f32.mrf.mxu1 }
 0x19f   :  { %v268_v63 = vadd.f32 %v560_v57, %v267_v62  ;;  %v298_v0 = vmax.f32 %v276_v60, 0.0 }
 0x1a0   :  { %v656_v1 = vpop.f32.mrf.mxu1 }
 0x1a1   :  { %v296_v3 = vmax.f32 %v268_v63, 0.0  ;;  %v304_v7 = vpack.c.bf16 %v298_v0, %v297_v4  ;;  %v289_v11 = vadd.f32 %v656_v1, %v560_v57 }
 0x1a2   :  { %v280_v5 = vpop.f32.mrf.mxu1 }
 0x1a3   :  { %v303_v6 = vpack.c.bf16 %v296_v3, %v295_v2  ;;  %v281_v9 = vadd.f32 %v560_v57, %v280_v5  ;;  %v301_v17 = vmax.f32 %v289_v11, 0.0 }
 0x1a4   :  { %v657_v8 = vpop.f32.mrf.mxu1 }
 0x1a5   :  { %v292_v10 = vadd.f32 %v657_v8, %v560_v57  ;;  %666 = vmatprep.mubr.msk.bf16.mxu0 %vm346_vm1, %v303_v6  ;;  %v299_v15 = vmax.f32 %v281_v9, 0.0 }
 0x1a6   :  { %v283_v12 = vpop.f32.mrf.mxu1  ;;  %667 = vmatmul.mubr.msk.bf16.vlgmr.msra.gmra.mxu0 %vm346_vm1, %v304_v7 }
 0x1a7   :  { %v284_v13 = vadd.f32 %v560_v57, %v283_v12  ;;  %v302_v14 = vmax.f32 %v292_v10, 0.0 }
 0x1a9   :  { %v300_v16 = vmax.f32 %v284_v13, 0.0  ;;  %v306_v19 = vpack.c.bf16 %v302_v14, %v301_v17 }
 0x1ab   :  { %v305_v18 = vpack.c.bf16 %v300_v16, %v299_v15 }
 0x1ad   :  { %670 = vmatprep.mubr.msk.bf16.mxu0 %vm346_vm1, %v305_v18 }
 0x1ae   :  { %671 = vmatmul.mubr.msk.bf16.gmra.mxu0 %vm346_vm1, %v306_v19 }
 0x1af   :  { %690 = vmatprep.mubr.msk.f32.mxu0 %vm735_vm2, %v734_v20 }
 0x266   :  { %v668_v23 = vpop.f32.mrf.mxu0 }
 0x267   :  { %v402_v41 = vadd.f32 %v668_v23, %v569_v29 }
 0x268   :  { %v393_v24 = vpop.f32.mrf.mxu0 }
 0x269   :  { %v426_v43 = vmax.f32 %v402_v41, 0.0  ;;  %v394_v45 = vadd.f32 %v569_v29, %v393_v24 }
 0x26a   :  { %v669_v25 = vpop.f32.mrf.mxu0 }
 0x26b   :  { %v405_v39 = vadd.f32 %v669_v25, %v569_v29  ;;  %v424_v47 = vmax.f32 %v394_v45, 0.0 }
 0x26c   :  { %v396_v26 = vpop.f32.mrf.mxu0 }
 0x26d   :  { %v427_v42 = vmax.f32 %v405_v39, 0.0  ;;  %v397_v44 = vadd.f32 %v569_v29, %v396_v26 }
 0x26e   :  { %v672_v27 = vpop.f32.mrf.mxu0 }
 0x26f   :  { %v418_v32 = vadd.f32 %v672_v27, %v569_v29  ;;  %v425_v46 = vmax.f32 %v397_v44, 0.0 }
 0x270   :  { %v409_v28 = vpop.f32.mrf.mxu0 }
 0x271   :  { %v430_v35 = vmax.f32 %v418_v32, 0.0  ;;  %v410_v37 = vadd.f32 %v569_v29, %v409_v28 }
 0x272   :  { %v673_v30 = vpop.f32.mrf.mxu0 }
 0x273   :  { %v421_v31 = vadd.f32 %v673_v30, %v569_v29  ;;  %v428_v40 = vmax.f32 %v410_v37, 0.0 }
 0x274   :  { %v412_v34 = vpop.f32.mrf.mxu0 }
 0x275   :  { %v431_v33 = vmax.f32 %v421_v31, 0.0  ;;  %v413_v36 = vadd.f32 %v569_v29, %v412_v34 }
 0x277   :  { %675 = vmatpush3.xpose.msk.msra.mxu0 %vm439_vm3, %v431_v33  ;;  %v429_v38 = vmax.f32 %v413_v36, 0.0 }
 0x278   :  { %676 = vmatprep.subr.mxu0 %v734_v20 }
 0x27b   :  { %677 = vmatpush3.xpose.msk.msra.mxu0 %vm439_vm3, %v430_v35 }
 0x27c   :  { %678 = vmatprep.subr.mxu0 %v734_v20 }
 0x27f   :  { %679 = vmatpush3.xpose.msk.msra.mxu0 %vm439_vm3, %v429_v38 }
 0x280   :  { %680 = vmatprep.subr.mxu0 %v734_v20 }
 0x283   :  { %681 = vmatpush3.xpose.msk.msra.mxu0 %vm439_vm3, %v428_v40 }
 0x284   :  { %682 = vmatprep.subr.mxu0 %v734_v20 }
 0x287   :  { %683 = vmatpush3.xpose.msk.msra.mxu0 %vm439_vm3, %v427_v42 }
 0x288   :  { %684 = vmatprep.subr.mxu0 %v734_v20 }
 0x28b   :  { %685 = vmatpush3.xpose.msk.msra.mxu0 %vm439_vm3, %v426_v43 }
 0x28c   :  { %686 = vmatprep.subr.mxu0 %v734_v20 }
 0x28f   :  { %687 = vmatpush3.xpose.msk.msra.mxu0 %vm439_vm3, %v425_v46 }
 0x290   :  { %688 = vmatprep.subr.mxu0 %v734_v20 }
 0x293   :  { %689 = vmatpush3.xpose.msk.msra.mxu0 %vm439_vm3, %v424_v47 }
 0x296   :  { %691 = vmatmul.mubr.msk.f32.vlgmr.msra.gmra.mxu0 %vm439_vm3, %v432_v48 }
 0x356   :  { %v533_v50 = vpop.f32.mrf.mxu0 }
 0x357   :  { %v534_v51 = vadd.f32 %v533_v50, %v437_v49 }
 0x358   :  { %v692_v52 = vpop.f32.mrf.mxu0 }
 0x359   :  { %538 = vst.msk [vmem:[#allocation2] sm:$0x3] %vm537_vm4, %v534_v51 }
 0x35a   :  { %723 = shalt.err (!%p720_p4)
}
 0x35b   :  { %548 = dma.vmem_to_hbm [thread:$0]  %s546_s13, 32, %s898_s9, [#allocation3]  }
 0x35c   :  { %732 = dma.done.wait [#allocation3], 32  }
 0x35d   :  { %733 = vsyncadd [#allocation3], 4294967264 }
 0x35e   :  { %552 = vsyncpa [#allocation3], 1 }

</bundles_post_ra>
